<compile_context>
chip_gen: v7x
topology: tpu7x:2x2x1
jax: 0.10.0
libtpu: 0.0.40
codegen_flags: <defaults>
</compile_context>

<pallas_src>
import jax
import jax.numpy as jnp
from jax.experimental import pallas as pl
from jax.experimental.pallas import tpu as pltpu


def _round_up(x, m):
    return (x + m - 1) // m * m


def _sigmoid(z):
    # exp lowers to the EUP; keep everything f32 (v5e has no bf16 VPU/EUP path).
    return 1.0 / (1.0 + jnp.exp(-z))


def actor_critic_kernel(x_ref, w1_ref, b1_ref, w2_ref, b2_ref,
                        wa_ref, ba_ref, wv_ref, bv_ref,
                        act_ref, val_ref):
    # Encoder: Linear -> Sigmoid -> Linear -> Sigmoid (all f32).
    x = x_ref[...]
    h1 = _sigmoid(
        jnp.dot(x, w1_ref[...], preferred_element_type=jnp.float32) + b1_ref[...]
    )
    h2 = _sigmoid(
        jnp.dot(h1, w2_ref[...], preferred_element_type=jnp.float32) + b2_ref[...]
    )

    # Actor head + numerically stable softmax (exact reciprocal on the EUP).
    logits = jnp.dot(h2, wa_ref[...], preferred_element_type=jnp.float32) + ba_ref[...]
    m = jnp.max(logits, axis=-1, keepdims=True)
    e = jnp.exp(logits - m)
    denom = jnp.sum(e, axis=-1, keepdims=True)
    act_ref[...] = (e * pl.reciprocal(denom, approx=False)).astype(act_ref.dtype)

    # Critic head written straight into its own output (no slab slice/concat).
    val_ref[...] = (
        jnp.dot(h2, wv_ref[...], preferred_element_type=jnp.float32) + bv_ref[...]
    ).astype(val_ref.dtype)


def actor_critic_forward(x, params, *, tile_b=1024):
    """x: (B, input_dim) float32.  Returns (action (B, output_dim), value (B, 1))."""
    B, input_dim = x.shape
    hidden = params["w1"].shape[1]
    n_act = params["wa"].shape[1]

    # VMEM per grid step (all blocks lane-padded to 128, double buffered):
    #   x      : tb * 128 * 4 B * 2
    #   action : tb * 128 * 4 B * 2
    #   value  : tb * 128 * 4 B * 2   (1 lane, still one lane-tile wide)
    # ~3 KiB per batch row -> tb=4096 is ~12 MiB, well under the 32 MiB scoped
    # default (v7x physical VMEM is only 64 MiB), so cap the tile there rather
    # than raising vmem_limit_bytes.  tile_b=1024 keeps per-step overhead
    # (~0.35 us) amortized at large B.
    tb = min(tile_b, 4096, _round_up(max(B, 1), 8))
    # v7x megacore: give the "parallel" batch axis at least 2 grid steps when
    # the batch is big enough to split, so both TensorCores get work.
    if B >= 256:
        tb = min(tb, _round_up(pl.cdiv(B, 2), 8))
    grid = (pl.cdiv(B, tb),)

    in_specs = [
        pl.BlockSpec((tb, input_dim), lambda i: (i, 0)),       # x: batch-tiled
        pl.BlockSpec((input_dim, hidden), lambda i: (0, 0)),   # weights/biases stay
        pl.BlockSpec((1, hidden), lambda i: (0, 0)),           # resident in VMEM
        pl.BlockSpec((hidden, hidden), lambda i: (0, 0)),
        pl.BlockSpec((1, hidden), lambda i: (0, 0)),
        pl.BlockSpec((hidden, n_act), lambda i: (0, 0)),
        pl.BlockSpec((1, n_act), lambda i: (0, 0)),
        pl.BlockSpec((hidden, 1), lambda i: (0, 0)),
        pl.BlockSpec((1, 1), lambda i: (0, 0)),
    ]
    out_specs = (
        pl.BlockSpec((tb, n_act), lambda i: (i, 0)),
        pl.BlockSpec((tb, 1), lambda i: (i, 0)),
    )

    # Advisory cost estimate so XLA can overlap this small, latency-bound call.
    flops = 2 * B * (input_dim * hidden + hidden * hidden + hidden * n_act + hidden)
    transcendentals = B * (2 * hidden + n_act)
    bytes_accessed = (
        x.size * x.dtype.itemsize
        + sum(params[k].size * params[k].dtype.itemsize
              for k in ("w1", "b1", "w2", "b2", "wa", "ba", "wv", "bv"))
        + B * n_act * 4 + B * 4
    )

    action, value = pl.pallas_call(
        actor_critic_kernel,
        out_shape=(jax.ShapeDtypeStruct((B, n_act), jnp.float32),
                   jax.ShapeDtypeStruct((B, 1), jnp.float32)),
        grid=grid,
        in_specs=in_specs,
        out_specs=out_specs,
        compiler_params=pltpu.CompilerParams(
            dimension_semantics=("parallel",),
        ),
        cost_estimate=pl.CostEstimate(
            flops=flops,
            transcendentals=transcendentals,
            bytes_accessed=bytes_accessed,
        ),
    )(x, params["w1"], params["b1"], params["w2"], params["b2"],
      params["wa"], params["ba"], params["wv"], params["bv"])

    return action, value


def init_params(key, input_dim, output_dim, hidden_dim):
    """nn.Linear-style init U(-1/sqrt(fan_in), 1/sqrt(fan_in)).

    Weights stored pre-transposed as (in_features, out_features), all f32."""
    def linear(key, fan_in, fan_out):
        kw, kb = jax.random.split(key)
        bound = 1.0 / jnp.sqrt(fan_in)
        w = jax.random.uniform(kw, (fan_in, fan_out), jnp.float32, -bound, bound)
        b = jax.random.uniform(kb, (1, fan_out), jnp.float32, -bound, bound)
        return w, b

    k1, k2, k3, k4 = jax.random.split(key, 4)
    w1, b1 = linear(k1, input_dim, hidden_dim)
    w2, b2 = linear(k2, hidden_dim, hidden_dim)
    wa, ba = linear(k3, hidden_dim, output_dim)
    wv, bv = linear(k4, hidden_dim, 1)
    return dict(w1=w1, b1=b1, w2=w2, b2=b2, wa=wa, ba=ba, wv=wv, bv=bv)


def reference_forward(x, p):
    """Pure-JAX f32 reference mirroring the PyTorch module."""
    h = jax.nn.sigmoid(x @ p["w1"] + p["b1"])
    h = jax.nn.sigmoid(h @ p["w2"] + p["b2"])
    action = jax.nn.softmax(h @ p["wa"] + p["ba"], axis=-1)
    value = h @ p["wv"] + p["bv"]
    return action, value


if __name__ == "__main__":
    key = jax.random.PRNGKey(0)
    kx, kp, kx2 = jax.random.split(key, 3)

    input_dim = 16
    output_dim = 8
    hidden_dim = 64
    params = init_params(kp, input_dim, output_dim, hidden_dim)

    # Small, latency-bound case (grid = (1,)).
    batch = 8
    x = jax.random.normal(kx, (batch, input_dim), jnp.float32)
    action, value = actor_critic_forward(x, params)
    action, value = jax.block_until_ready((action, value))

    ref_action, ref_value = reference_forward(x, params)
    assert action.shape == (batch, output_dim)
    assert value.shape == (batch, 1)
    assert jnp.allclose(action, ref_action, atol=1e-2, rtol=1e-2)
    assert jnp.allclose(value, ref_value, atol=1e-2, rtol=1e-2)
    assert jnp.allclose(jnp.sum(action, axis=-1), 1.0, atol=1e-4)

    # Larger batch: exercises the multi-step batch grid (2 steps -> both v7x
    # TensorCores) and a partial last tile.
    batch2 = 300
    x2 = jax.random.normal(kx2, (batch2, input_dim), jnp.float32)
    action2, value2 = jax.block_until_ready(actor_critic_forward(x2, params))
    ref_action2, ref_value2 = reference_forward(x2, params)
    assert action2.shape == (batch2, output_dim)
    assert value2.shape == (batch2, 1)
    assert jnp.allclose(action2, ref_action2, atol=1e-2, rtol=1e-2)
    assert jnp.allclose(value2, ref_value2, atol=1e-2, rtol=1e-2)
    assert jnp.allclose(jnp.sum(action2, axis=-1), 1.0, atol=1e-4)

    print("KERNEL_OK")
</pallas_src>

<mosaic_0001>
module attributes {stable_mosaic.version = 11 : i64} {
  func.func @actor_critic_kernel(%arg0: i32, %arg1: memref<8x16xf32, #tpu.memory_space<vmem>>, %arg2: memref<16x64xf32, #tpu.memory_space<vmem>>, %arg3: memref<1x64xf32, #tpu.memory_space<vmem>>, %arg4: memref<64x64xf32, #tpu.memory_space<vmem>>, %arg5: memref<1x64xf32, #tpu.memory_space<vmem>>, %arg6: memref<64x8xf32, #tpu.memory_space<vmem>>, %arg7: memref<1x8xf32, #tpu.memory_space<vmem>>, %arg8: memref<64x1xf32, #tpu.memory_space<vmem>>, %arg9: memref<1x1xf32, #tpu.memory_space<vmem>>, %arg10: memref<8x8xf32, #tpu.memory_space<vmem>>, %arg11: memref<8x1xf32, #tpu.memory_space<vmem>>) attributes {dimension_semantics = [#tpu.dimension_semantics<parallel>], iteration_bounds = array<i64: 1>, scalar_prefetch = 0 : i64, scratch_operands = 0 : i64, tpu.core_type = #tpu.core_type<tc>, window_params = [{transform_indices = @transform_0, window_bounds = array<i64: 8, 16>}, {pipeline_mode = #tpu.pipeline_mode<synchronous>, transform_indices = @transform_1, window_bounds = array<i64: 16, 64>}, {pipeline_mode = #tpu.pipeline_mode<synchronous>, transform_indices = @transform_2, window_bounds = array<i64: 1, 64>}, {pipeline_mode = #tpu.pipeline_mode<synchronous>, transform_indices = @transform_3, window_bounds = array<i64: 64, 64>}, {pipeline_mode = #tpu.pipeline_mode<synchronous>, transform_indices = @transform_4, window_bounds = array<i64: 1, 64>}, {pipeline_mode = #tpu.pipeline_mode<synchronous>, transform_indices = @transform_5, window_bounds = array<i64: 64, 8>}, {pipeline_mode = #tpu.pipeline_mode<synchronous>, transform_indices = @transform_6, window_bounds = array<i64: 1, 8>}, {pipeline_mode = #tpu.pipeline_mode<synchronous>, transform_indices = @transform_7, window_bounds = array<i64: 64, 1>}, {pipeline_mode = #tpu.pipeline_mode<synchronous>, transform_indices = @transform_8, window_bounds = array<i64: 1, 1>}, {transform_indices = @transform_9, window_bounds = array<i64: 8, 8>}, {transform_indices = @transform_10, window_bounds = array<i64: 8, 1>}]} {
    %c0 = arith.constant 0 : index
    %c0_0 = arith.constant 0 : index
    %0 = vector.load %arg1[%c0, %c0_0] : memref<8x16xf32, #tpu.memory_space<vmem>>, vector<8x16xf32>
    %c0_1 = arith.constant 0 : index
    %c0_2 = arith.constant 0 : index
    %1 = vector.load %arg2[%c0_1, %c0_2] : memref<16x64xf32, #tpu.memory_space<vmem>>, vector<16x64xf32>
    %cst = arith.constant dense<0.000000e+00> : vector<8x64xf32>
    %2 = tpu.matmul %0, %1, %cst {dimension_numbers = #tpu.dot_dimension_numbers<[1], [0], [0], [1], [0, 0, 1, 1], [], []>} : vector<8x16xf32>, vector<16x64xf32>, vector<8x64xf32> -> vector<8x64xf32>
    %c0_3 = arith.constant 0 : index
    %c0_4 = arith.constant 0 : index
    %3 = vector.load %arg3[%c0_3, %c0_4] : memref<1x64xf32, #tpu.memory_space<vmem>>, vector<1x64xf32>
    %4 = vector.broadcast %3 : vector<1x64xf32> to vector<8x64xf32>
    %5 = arith.addf %2, %4 : vector<8x64xf32>
    %cst_5 = arith.constant 0.000000e+00 : f32
    %6 = vector.broadcast %cst_5 : f32 to vector<8x64xf32>
    %7 = arith.subf %6, %5 : vector<8x64xf32>
    %8 = math.exp %7 : vector<8x64xf32>
    %cst_6 = arith.constant 1.000000e+00 : f32
    %9 = vector.broadcast %cst_6 : f32 to vector<8x64xf32>
    %10 = arith.addf %9, %8 : vector<8x64xf32>
    %cst_7 = arith.constant 1.000000e+00 : f32
    %11 = vector.broadcast %cst_7 : f32 to vector<8x64xf32>
    %12 = arith.divf %11, %10 : vector<8x64xf32>
    %c0_8 = arith.constant 0 : index
    %c0_9 = arith.constant 0 : index
    %13 = vector.load %arg4[%c0_8, %c0_9] : memref<64x64xf32, #tpu.memory_space<vmem>>, vector<64x64xf32>
    %cst_10 = arith.constant dense<0.000000e+00> : vector<8x64xf32>
    %14 = tpu.matmul %12, %13, %cst_10 {dimension_numbers = #tpu.dot_dimension_numbers<[1], [0], [0], [1], [0, 0, 1, 1], [], []>} : vector<8x64xf32>, vector<64x64xf32>, vector<8x64xf32> -> vector<8x64xf32>
    %c0_11 = arith.constant 0 : index
    %c0_12 = arith.constant 0 : index
    %15 = vector.load %arg5[%c0_11, %c0_12] : memref<1x64xf32, #tpu.memory_space<vmem>>, vector<1x64xf32>
    %16 = vector.broadcast %15 : vector<1x64xf32> to vector<8x64xf32>
    %17 = arith.addf %14, %16 : vector<8x64xf32>
    %cst_13 = arith.constant 0.000000e+00 : f32
    %18 = vector.broadcast %cst_13 : f32 to vector<8x64xf32>
    %19 = arith.subf %18, %17 : vector<8x64xf32>
    %20 = math.exp %19 : vector<8x64xf32>
    %cst_14 = arith.constant 1.000000e+00 : f32
    %21 = vector.broadcast %cst_14 : f32 to vector<8x64xf32>
    %22 = arith.addf %21, %20 : vector<8x64xf32>
    %cst_15 = arith.constant 1.000000e+00 : f32
    %23 = vector.broadcast %cst_15 : f32 to vector<8x64xf32>
    %24 = arith.divf %23, %22 : vector<8x64xf32>
    %c0_16 = arith.constant 0 : index
    %c0_17 = arith.constant 0 : index
    %25 = vector.load %arg6[%c0_16, %c0_17] : memref<64x8xf32, #tpu.memory_space<vmem>>, vector<64x8xf32>
    %cst_18 = arith.constant dense<0.000000e+00> : vector<8x8xf32>
    %26 = tpu.matmul %24, %25, %cst_18 {dimension_numbers = #tpu.dot_dimension_numbers<[1], [0], [0], [1], [0, 0, 1, 1], [], []>} : vector<8x64xf32>, vector<64x8xf32>, vector<8x8xf32> -> vector<8x8xf32>
    %c0_19 = arith.constant 0 : index
    %c0_20 = arith.constant 0 : index
    %27 = vector.load %arg7[%c0_19, %c0_20] : memref<1x8xf32, #tpu.memory_space<vmem>>, vector<1x8xf32>
    %28 = vector.broadcast %27 : vector<1x8xf32> to vector<8x8xf32>
    %29 = arith.addf %26, %28 : vector<8x8xf32>
    %cst_21 = arith.constant dense<0xFF800000> : vector<8xf32>
    %30 = vector.multi_reduction <maximumf>, %29, %cst_21 [1] : vector<8x8xf32> to vector<8xf32>
    %31 = vector.shape_cast %30 : vector<8xf32> to vector<8x1xf32>
    %32 = vector.broadcast %31 : vector<8x1xf32> to vector<8x8xf32>
    %33 = arith.subf %29, %32 : vector<8x8xf32>
    %34 = math.exp %33 : vector<8x8xf32>
    %cst_22 = arith.constant dense<0.000000e+00> : vector<8xf32>
    %35 = vector.multi_reduction <add>, %34, %cst_22 [1] : vector<8x8xf32> to vector<8xf32>
    %36 = vector.shape_cast %35 : vector<8xf32> to vector<8x1xf32>
    %37 = tpu.reciprocal %36 : vector<8x1xf32> -> vector<8x1xf32>
    %38 = vector.broadcast %37 : vector<8x1xf32> to vector<8x8xf32>
    %39 = arith.mulf %34, %38 : vector<8x8xf32>
    %c0_23 = arith.constant 0 : index
    %c0_24 = arith.constant 0 : index
    %40 = vector.load %arg10[%c0_23, %c0_24] : memref<8x8xf32, #tpu.memory_space<vmem>>, vector<8x8xf32>
    tpu.vector_store %arg10[%c0_23, %c0_24], %39 {strides = array<i32>} : memref<8x8xf32, #tpu.memory_space<vmem>>, vector<8x8xf32>,
    %c0_25 = arith.constant 0 : index
    %c0_26 = arith.constant 0 : index
    %41 = vector.load %arg8[%c0_25, %c0_26] : memref<64x1xf32, #tpu.memory_space<vmem>>, vector<64x1xf32>
    %cst_27 = arith.constant dense<0.000000e+00> : vector<8x1xf32>
    %42 = tpu.matmul %24, %41, %cst_27 {dimension_numbers = #tpu.dot_dimension_numbers<[1], [0], [0], [1], [0, 0, 1, 1], [], []>} : vector<8x64xf32>, vector<64x1xf32>, vector<8x1xf32> -> vector<8x1xf32>
    %c0_28 = arith.constant 0 : index
    %c0_29 = arith.constant 0 : index
    %43 = vector.load %arg9[%c0_28, %c0_29] : memref<1x1xf32, #tpu.memory_space<vmem>>, vector<1x1xf32>
    %44 = vector.broadcast %43 : vector<1x1xf32> to vector<8x1xf32>
    %45 = arith.addf %42, %44 : vector<8x1xf32>
    %c0_30 = arith.constant 0 : index
    %c0_31 = arith.constant 0 : index
    %46 = vector.load %arg11[%c0_30, %c0_31] : memref<8x1xf32, #tpu.memory_space<vmem>>, vector<8x1xf32>
    tpu.vector_store %arg11[%c0_30, %c0_31], %45 {strides = array<i32>} : memref<8x1xf32, #tpu.memory_space<vmem>>, vector<8x1xf32>,
    return
  }
  func.func @transform_0(%arg0: i32) -> (i32, i32) {
    %c0_i32 = arith.constant 0 : i32
    %c0_i32_0 = arith.constant 0 : i32
    return %arg0, %c0_i32 : i32, i32
  }
  func.func @transform_1(%arg0: i32) -> (i32, i32) {
    %c0_i32 = arith.constant 0 : i32
    %c0_i32_0 = arith.constant 0 : i32
    %c0_i32_1 = arith.constant 0 : i32
    return %c0_i32, %c0_i32_0 : i32, i32
  }
  func.func @transform_2(%arg0: i32) -> (i32, i32) {
    %c0_i32 = arith.constant 0 : i32
    %c0_i32_0 = arith.constant 0 : i32
    %c0_i32_1 = arith.constant 0 : i32
    return %c0_i32, %c0_i32_0 : i32, i32
  }
  func.func @transform_3(%arg0: i32) -> (i32, i32) {
    %c0_i32 = arith.constant 0 : i32
    %c0_i32_0 = arith.constant 0 : i32
    %c0_i32_1 = arith.constant 0 : i32
    return %c0_i32, %c0_i32_0 : i32, i32
  }
  func.func @transform_4(%arg0: i32) -> (i32, i32) {
    %c0_i32 = arith.constant 0 : i32
    %c0_i32_0 = arith.constant 0 : i32
    %c0_i32_1 = arith.constant 0 : i32
    return %c0_i32, %c0_i32_0 : i32, i32
  }
  func.func @transform_5(%arg0: i32) -> (i32, i32) {
    %c0_i32 = arith.constant 0 : i32
    %c0_i32_0 = arith.constant 0 : i32
    %c0_i32_1 = arith.constant 0 : i32
    return %c0_i32, %c0_i32_0 : i32, i32
  }
  func.func @transform_6(%arg0: i32) -> (i32, i32) {
    %c0_i32 = arith.constant 0 : i32
    %c0_i32_0 = arith.constant 0 : i32
    %c0_i32_1 = arith.constant 0 : i32
    return %c0_i32, %c0_i32_0 : i32, i32
  }
  func.func @transform_7(%arg0: i32) -> (i32, i32) {
    %c0_i32 = arith.constant 0 : i32
    %c0_i32_0 = arith.constant 0 : i32
    %c0_i32_1 = arith.constant 0 : i32
    return %c0_i32, %c0_i32_0 : i32, i32
  }
  func.func @transform_8(%arg0: i32) -> (i32, i32) {
    %c0_i32 = arith.constant 0 : i32
    %c0_i32_0 = arith.constant 0 : i32
    %c0_i32_1 = arith.constant 0 : i32
    return %c0_i32, %c0_i32_0 : i32, i32
  }
  func.func @transform_9(%arg0: i32) -> (i32, i32) {
    %c0_i32 = arith.constant 0 : i32
    %c0_i32_0 = arith.constant 0 : i32
    return %arg0, %c0_i32 : i32, i32
  }
  func.func @transform_10(%arg0: i32) -> (i32, i32) {
    %c0_i32 = arith.constant 0 : i32
    %c0_i32_0 = arith.constant 0 : i32
    return %arg0, %c0_i32 : i32, i32
  }
}

</mosaic_0001>

<bundles_post_ra>
// kernel: tpu_custom_call.1
= control target key start
LH: loop header
LB: loop body
LE: loop exit
PB: predicated region body
PF: predicated region fallthrough
CT: control target
= control target key end

     0   :  { %s799_s0 = inlined_call_operand.vmem [shape: f32[8,16], index: 0, kind: input, shape index: {}]   ;;  %s800_s1 = inlined_call_operand.vmem [shape: f32[16,64], index: 1, kind: input, shape index: {}]   ;;  %s801_s2 = inlined_call_operand.vmem [shape: f32[1,64], index: 2, kind: input, shape index: {}]   ;;  %s802_s3 = inlined_call_operand.vmem [shape: f32[64,64], index: 3, kind: input, shape index: {}]   ;;  %s803_s4 = inlined_call_operand.vmem [shape: f32[1,64], index: 4, kind: input, shape index: {}]   ;;  %s804_s5 = inlined_call_operand.vmem [shape: f32[64,8], index: 5, kind: input, shape index: {}]   ;;  %s805_s6 = inlined_call_operand.vmem [shape: f32[1,8], index: 6, kind: input, shape index: {}]   ;;  %s806_s7 = inlined_call_operand.vmem [shape: f32[64,1], index: 7, kind: input, shape index: {}]   ;;  %s807_s8 = inlined_call_operand.<no memory space> [shape: f32[1,1], index: 8, kind: input, shape index: {}]   ;;  %s808_s9 = inlined_call_operand.hbm [shape: f32[8,8], index: 9, kind: output, shape index: {0}]   ;;  %s809_s10 = inlined_call_operand.vmem [shape: f32[8,1], index: 10, kind: output, shape index: {1}]  }
   0x1   :  { %v16_v0 = vstv %s807_s8 }
   0x2   :  { %17 = vst [vmem:[#allocation2] sm:$0x1] %v16_v0 }
   0x3   :  { %v38_v1 = vld [vmem:[%s800_s1] sm:$0xff]  ;;  %v39_v2 = vld [vmem:[%s800_s1 + $0x8] sm:$0xff]  ;;  %v609_v3 = vmov 0.0|0.0   ;;  %vm610_vm0 = vmmov 0   ;;  %v611_v5 = vmov 0.0  }
   0x4   :  { %530 = vmatprep.subr.bf16.mxu0 %v609_v3  ;;  %v531_v4 = vpack.c.bf16 %v39_v2, %v38_v1  ;;  %470 = vmatprep.mubr.msk.f32.mxu0 %vm610_vm0, %v611_v5 }
   0x5   :  { %18 = vsyncpa [#allocation4], 0  ;;  %533 = vmatprep.subr.bf16.mxu1 %v609_v3  ;;  %489 = vmatprep.mubr.msk.f32.mxu1 %vm610_vm0, %v611_v5  ;;  %v37_v6 = vld [vmem:[%s799_s0] sm:$0xff]  ;;  %vm47_vm1 = vcmask 130048   ;;  %v128_v8 = vld [vmem:[%s802_s3 + $0x8] sm:$0xff]  ;;  %vm142_vm2 = vcmask 523264  }
   0x6   :  { %532 = vmatpush3.bf16.msra.mxu0 %v531_v4  ;;  %v127_v7 = vld [vmem:[%s802_s3] sm:$0xff]  ;;  %v129_v10 = vld [vmem:[%s802_s3 + $0x10] sm:$0xff]  ;;  %v130_v11 = vld [vmem:[%s802_s3 + $0x18] sm:$0xff]  ;;  %vm408_vm3 = vcmask 7168   ;;  %vm310_vm4 = vcmask 64512  }
   0x7   :  { %545 = vmatprep.subr.bf16.mxu0 %v609_v3  ;;  %v534_v9 = vpack.c.bf16 %v128_v8, %v127_v7  ;;  %v537_v12 = vpack.c.bf16 %v130_v11, %v129_v10  ;;  %v131_v13 = vld [vmem:[%s802_s3 + $0x20] sm:$0xff]  ;;  %v132_v14 = vld [vmem:[%s802_s3 + $0x28] sm:$0xff]  ;;  %v133_v16 = vld [vmem:[%s802_s3 + $0x30] sm:$0xff] }
   0x8   :  { %v540_v15 = vpack.c.bf16 %v132_v14, %v131_v13  ;;  %v134_v17 = vld [vmem:[%s802_s3 + $0x38] sm:$0xff]  ;;  %v428_v19 = vld [vmem:[%s801_s2] ss:$0 sm:$0xff]  ;;  %v223_v29 = vld [vmem:[%s804_s5 + $0x8] sm:$0xff] }
   0x9   :  { %471 = vmatmul.mubr.msk.f32.vlgmr.msra.gmra.mrb[0].mxu0 %vm47_vm1, %v37_v6  ;;  %535 = vmatpush3.bf16.msra.mxu1 %v534_v9  ;;  %v543_v18 = vpack.c.bf16 %v134_v17, %v133_v16  ;;  %v222_v28 = vld [vmem:[%s804_s5] sm:$0xff]  ;;  %v324_v32 = vld [vmem:[%s806_s7 + $0x8] sm:$0xff]  ;;  %v224_v34 = vld [vmem:[%s804_s5 + $0x10] sm:$0xff] }
   0xa   :  { %508 = vmatprep.mubr.msk.f32.mxu0 %vm610_vm0, %v611_v5  ;;  %536 = vmatprep.subr.bf16.mxu1 %v609_v3  ;;  %v323_v30 = vld [vmem:[%s806_s7] sm:$0xff]  ;;  %v546_v31 = vpack.c.bf16 %v223_v29, %v222_v28  ;;  %v225_v35 = vld [vmem:[%s804_s5 + $0x18] sm:$0xff]  ;;  %v325_v36 = vld [vmem:[%s806_s7 + $0x10] sm:$0xff] }
   0xb   :  { %v558_v33 = vpack.c.bf16 %v324_v32, %v323_v30  ;;  %v549_v37 = vpack.c.bf16 %v225_v35, %v224_v34  ;;  %v326_v38 = vld [vmem:[%s806_s7 + $0x18] sm:$0xff]  ;;  %v226_v40 = vld [vmem:[%s804_s5 + $0x20] sm:$0xff]  ;;  %v227_v41 = vld [vmem:[%s804_s5 + $0x28] sm:$0xff] }
   0xc   :  { %547 = vmatpush3.bf16.msra.mxu0 %v546_v31  ;;  %v561_v39 = vpack.c.bf16 %v326_v38, %v325_v36  ;;  %v327_v42 = vld [vmem:[%s806_s7 + $0x20] sm:$0xff]  ;;  %v552_v43 = vpack.c.bf16 %v227_v41, %v226_v40  ;;  %v328_v44 = vld [vmem:[%s806_s7 + $0x28] sm:$0xff]  ;;  %v228_v45 = vld [vmem:[%s804_s5 + $0x30] sm:$0xff] }
   0xd   :  { %538 = vmatpush3.bf16.msra.mxu1 %v537_v12  ;;  %548 = vmatprep.subr.bf16.mxu0 %v609_v3  ;;  %v229_v46 = vld [vmem:[%s804_s5 + $0x38] sm:$0xff]  ;;  %v564_v47 = vpack.c.bf16 %v328_v44, %v327_v42  ;;  %v329_v48 = vld [vmem:[%s806_s7 + $0x30] sm:$0xff]  ;;  %v430_v52 = vld [vmem:[%s803_s4] ss:$0 sm:$0xff] }
   0xe   :  { %539 = vmatprep.subr.bf16.mxu1 %v609_v3  ;;  %v330_v49 = vld [vmem:[%s806_s7 + $0x38] sm:$0xff]  ;;  %v555_v50 = vpack.c.bf16 %v229_v46, %v228_v45  ;;  %v432_v61 = vld [vmem:[%s805_s6] ss:$0 sm:$0xff]  ;;  %s612_s6 = smov [#allocation3]  }
   0xf   :  { %v567_v51 = vpack.c.bf16 %v330_v49, %v329_v48  ;;  %v434_v62 = vld [vmem:[#allocation2] ss:$0 sm:$0xff]  ;;  %s416_s22 = sshll.u32 %s612_s6, 4  ;;  %s417_s22 = int_to_ptr.vmem [resolvable:$true] %s416_s22 }
  0x10   :  { %550 = vmatpush3.bf16.msra.mxu0 %v549_v37  ;;  %p590_p1 = scmp.lt.s32.totalorder %s417_s22, %s417_s22 }
  0x11   :  { %541 = vmatpush3.bf16.msra.mxu1 %v540_v15  ;;  %551 = vmatprep.subr.bf16.mxu0 %v609_v3 }
  0x12   :  { %542 = vmatprep.subr.bf16.mxu1 %v609_v3 }
  0x14   :  { %553 = vmatpush3.bf16.msra.mxu0 %v552_v43 }
  0x15   :  { %544 = vmatpush3.bf16.msra.mxu1 %v543_v18  ;;  %554 = vmatprep.subr.bf16.mxu0 %v609_v3 }
  0x16   :  { %557 = vmatprep.subr.bf16.mxu1 %v609_v3 }
  0x18   :  { %556 = vmatpush3.bf16.msra.mxu0 %v555_v50 }
  0xdc   :  { %v117_v20 = vpop.f32.mrb[0].mxu0 }
  0xdd   :  { %v118_v21 = vadd.f32 %v428_v19, %v117_v20  ;;  %v472_v22 = vpop.f32.mrb[1].mxu0 }
  0xdf   :  { %v121_v23 = vsub.f32 0.0, %v118_v21 }
  0xe1   :  { %v122_v24 = vmul.f32 1.442695, %v121_v23 }
  0xe3   :  { %573 = vpow2.f32 %v122_v24 }
  0xed   :  { %v574_v25 = vpop.eup %573 }
  0xee   :  { %v124_v26 = vadd.f32 1.0, %v574_v25 }
  0xf0   :  { %575 = vrcp.f32 %v124_v26 }
  0xfa   :  { %v576_v27 = vpop.eup %575 }
  0xfb   :  { %490 = vmatmul.mubr.msk.f32.vlgmr.msra.gmra.mrb[0].mxu1 %vm142_vm2, %v576_v27 }
  0xfc   :  { %527 = vmatprep.mubr.msk.f32.mxu1 %vm610_vm0, %v611_v5  ;;  %559 = vmatpush3.bf16.msra.mxu1 %v558_v33 }
  0xfd   :  { %560 = vmatprep.subr.bf16.mxu1 %v609_v3 }
 0x100   :  { %562 = vmatpush3.bf16.msra.mxu1 %v561_v39 }
 0x101   :  { %563 = vmatprep.subr.bf16.mxu1 %v609_v3 }
 0x104   :  { %565 = vmatpush3.bf16.msra.mxu1 %v564_v47 }
 0x105   :  { %566 = vmatprep.subr.bf16.mxu1 %v609_v3 }
 0x108   :  { %568 = vmatpush3.bf16.msra.mxu1 %v567_v51 }
 0x1ce   :  { %v212_v53 = vpop.f32.mrb[0].mxu1 }
 0x1cf   :  { %v213_v54 = vadd.f32 %v430_v52, %v212_v53  ;;  %v491_v55 = vpop.f32.mrb[1].mxu1 }
 0x1d1   :  { %v216_v56 = vsub.f32 0.0, %v213_v54 }
 0x1d3   :  { %v217_v57 = vmul.f32 1.442695, %v216_v56 }
 0x1d5   :  { %577 = vpow2.f32 %v217_v57 }
 0x1df   :  { %v578_v58 = vpop.eup %577 }
 0x1e0   :  { %v219_v59 = vadd.f32 1.0, %v578_v58 }
 0x1e2   :  { %579 = vrcp.f32 %v219_v59 }
 0x1ec   :  { %v580_v60 = vpop.eup %579 }
 0x1ed   :  { %509 = vmatmul.mubr.msk.f32.vlgmr.msra.gmra.mrb[2].mxu0 %vm142_vm2, %v580_v60  ;;  %528 = vmatmul.mubr.msk.f32.vlgmr.msra.gmra.mrb[2].mxu1 %vm142_vm2, %v580_v60 }
 0x2c0   :  { %v306_v63 = vpop.f32.mrb[2].mxu0  ;;  %v404_v0 = vpop.f32.mrb[2].mxu1 }
 0x2c1   :  { %v307_v1 = vadd.f32 %v432_v61, %v306_v63  ;;  %v405_v2 = vadd.f32 %v434_v62, %v404_v0  ;;  %v510_v3 = vpop.f32.mrb[3].mxu0  ;;  %v529_v4 = vpop.f32.mrb[3].mxu1 }
 0x2c3   :  { %409 = vst.msk [vmem:[%s809_s10] sm:$0xff] %vm408_vm3, %v405_v2  ;;  %v311_v5 = vsel %vm310_vm4, %v307_v1, -inf  ;;  %s585_s10 = scalar_lea.vmem %s417_s22, 128 }
 0x2c4   :  { %312 = vmax.xlane.f32.xlu0 %v311_v5  ;;  %p586_p0 = scmp.ne.s32.totalorder %s417_s22, %s585_s10  ;;  %p591_p2 = scmp.lt.s32.totalorder %s585_s10, %s585_s10 }
 0x2c6   :  { %p592_p3 = por %p591_p2, %p590_p1 }
 0x2c8   :  { %p593_p4 = pnand %p592_p3, %p586_p0 }
 0x351   :  { %v313_v6 = vpop.xlane.xlu0 %312 }
 0x352   :  { %v314_v7 = vsub.f32 %v307_v1, %v313_v6 }
 0x354   :  { %v315_v8 = vmul.f32 1.442695, %v314_v7 }
 0x356   :  { %581 = vpow2.f32 %v315_v8 }
 0x360   :  { %v582_v9 = vpop.eup %581 }
 0x361   :  { %v317_v10 = vsel %vm310_vm4, %v582_v9, 0.0 }
 0x362   :  { %318 = vadd.xlane.f32.xlu0 %v317_v10 }
 0x3ef   :  { %v319_v11 = vpop.xlane.xlu0 %318 }
 0x3f0   :  { %583 = vrcp.f32 %v319_v11 }
 0x3fa   :  { %v584_v12 = vpop.eup %583 }
 0x3fb   :  { %v321_v13 = vmul.f32 %v584_v12, %v582_v9 }
 0x3fd   :  { %322 = vst.msk [vmem:[#allocation3] sm:$0xff] %vm310_vm4, %v321_v13 }
 0x3fe   :  { %596 = shalt.err (!%p593_p4)
}
 0x3ff   :  { %s597_s24 = scalar_lea.hbm %s808_s9, 128 }
 0x400   :  { %p598_p5 = scmp.ne.s32.totalorder %s808_s9, %s597_s24  ;;  %p601_p6 = scmp.lt.u32.totalorder %s597_s24, %s808_s9 }
 0x402   :  { %p603_p7 = pnand %p601_p6, %p598_p5 }
 0x404   :  { %606 = shalt.err (!%p603_p7)
}
 0x405   :  { %419 = dma.vmem_to_hbm [thread:$0]  %s417_s22, 128, %s808_s9, [#allocation4]  }
 0x406   :  { %607 = dma.done.wait [#allocation4], 128  }
 0x407   :  { %608 = vsyncadd [#allocation4], 4294967168 }
 0x408   :  { %427 = vsyncpa [#allocation4], 1 }

</bundles_post_ra>
